<compile_context>
chip_gen: v7x
topology: tpu7x:2x2x1
jax: 0.10.0
libtpu: 0.0.40
codegen_flags: <defaults>
</compile_context>

<pallas_src>
import functools
import math

import jax
import jax.numpy as jnp
from jax import lax
from jax.experimental import pallas as pl
from jax.experimental.pallas import tpu as pltpu

NUM_GROUPS = 8
EPS = 1e-5
VMEM_LIMIT = 48 * 1024 * 1024  # below v7x's 64 MiB physical, well under v5e/v6e 128 MiB


# ---------------------------------------------------------------------------
# Kernel 1: GroupNorm affine application + fused QKV projection.
# ---------------------------------------------------------------------------
def norm_qkv_kernel(x_ref, scale_ref, shift_ref, w_ref, b_ref,
                    q_ref, k_ref, v_ref):
    c = q_ref.shape[-1]
    # normalize (per-batch scale/shift precomputed) and cast to bf16 for the MXU
    hn = (x_ref[0] * scale_ref[0] + shift_ref[0]).astype(jnp.bfloat16)
    # one fused (thw, C) x (C, 3C) matmul for q|k|v (1/sqrt(C) folded into q part)
    qkv = jnp.dot(hn, w_ref[...], preferred_element_type=jnp.float32) + b_ref[...]
    q_ref[0] = qkv[:, :c].astype(jnp.bfloat16)
    k_ref[0] = qkv[:, c:2 * c].astype(jnp.bfloat16)
    v_ref[0] = qkv[:, 2 * c:].astype(jnp.bfloat16)


# ---------------------------------------------------------------------------
# Kernel 2: flash-style attention (resident K/V) + output proj + residual.
# ---------------------------------------------------------------------------
def attn_proj_kernel(tkv, q_ref, k_ref, v_ref, x_ref, wp_ref, bp_ref, o_ref):
    q = q_ref[0]                                  # (tq, C) bf16, pre-scaled by 1/sqrt(C)
    tq, c = q.shape
    n_kv = k_ref.shape[1] // tkv                  # K/V are full (HW, C) VMEM residents

    def body(j, carry):
        m_prev, l_prev, acc_prev = carry
        start = pl.multiple_of(j * tkv, tkv)
        k = k_ref[0, pl.ds(start, tkv), :]        # (tkv, C) bf16, no HBM traffic
        v = v_ref[0, pl.ds(start, tkv), :]
        s = lax.dot_general(q, k, (((1,), (1,)), ((), ())),
                            preferred_element_type=jnp.float32)      # (tq, tkv) f32
        m_new = jnp.maximum(m_prev, jnp.max(s, axis=-1, keepdims=True))
        alpha = jnp.exp(m_prev - m_new)
        p = jnp.exp(s - m_new)
        l_new = alpha * l_prev + jnp.sum(p, axis=-1, keepdims=True)
        acc_new = alpha * acc_prev + jnp.dot(
            p.astype(jnp.bfloat16), v, preferred_element_type=jnp.float32)
        return m_new, l_new, acc_new

    m0 = jnp.full((tq, 1), -jnp.inf, jnp.float32)
    l0 = jnp.zeros((tq, 1), jnp.float32)
    a0 = jnp.zeros((tq, c), jnp.float32)
    _m, l, acc = lax.fori_loop(0, n_kv, body, (m0, l0, a0), unroll=(n_kv <= 8))

    h = (acc / l).astype(jnp.bfloat16)            # exact softmax normalization
    out = x_ref[0] + jnp.dot(h, wp_ref[...],
                             preferred_element_type=jnp.float32) + bp_ref[...]
    o_ref[0] = out.astype(o_ref.dtype)


def _pick_tile(extent, target):
    """Largest tile <= target dividing `extent`; prefer lane-friendly multiples
    of 256, then 128, then sublane multiples of 8; fall back to full extent."""
    if extent <= target:
        return extent
    for align in (256, 128, 8):
        t = (target // align) * align
        while t >= align:
            if extent % t == 0:
                return t
            t -= align
    return extent


def attention_block(x_nchw, gamma, beta, wqkv, bqkv, wproj, bproj,
                    *, hw_tile=512, q_tile=512, kv_tile=512):
    B, C, H, W = x_nchw.shape
    HW = H * W
    assert C % NUM_GROUPS == 0
    gsize = C // NUM_GROUPS

    x_nchw = x_nchw.astype(jnp.float32)

    # ---- GroupNorm statistics: tiny (B, G) reduction in plain XLA,
    #      numerically safe two-pass variance (matches torch GN, biased) ----
    xg = x_nchw.reshape(B, NUM_GROUPS, gsize * HW)
    mean_g = jnp.mean(xg, axis=-1)                                      # (B, G)
    var_g = jnp.mean(jnp.square(xg - mean_g[..., None]), axis=-1)       # (B, G)
    inv_g = lax.rsqrt(var_g + EPS)
    mean_c = jnp.repeat(mean_g, gsize, axis=1)                          # (B, C)
    inv_c = jnp.repeat(inv_g, gsize, axis=1)
    scale = (inv_c * gamma[None, :]).reshape(B, 1, C).astype(jnp.float32)
    shift = (beta[None, :] - mean_c * inv_c * gamma[None, :]
             ).reshape(B, 1, C).astype(jnp.float32)

    # ---- channels-last working layout: channels on the lane axis ----
    # TODO(synk): keep the surrounding model in (B, HW, C) layout to drop these
    # two XLA transpose passes; kept so the public interface stays NCHW.
    x = jnp.transpose(x_nchw.reshape(B, C, HW), (0, 2, 1))              # (B, HW, C)

    # ---- fused QKV weight (C, 3C) bf16, 1/sqrt(C) folded into the q part ----
    att_scale = 1.0 / math.sqrt(C)
    wq, wk, wv = wqkv[:C], wqkv[C:2 * C], wqkv[2 * C:]
    w_fused = jnp.concatenate([(wq * att_scale).T, wk.T, wv.T],
                              axis=1).astype(jnp.bfloat16)              # (C, 3C)
    b_fused = jnp.concatenate([bqkv[:C] * att_scale, bqkv[C:2 * C], bqkv[2 * C:]]
                              ).reshape(1, 3 * C).astype(jnp.float32)
    wpT = wproj.T.astype(jnp.bfloat16)                                  # (C, C)
    bp = bproj.reshape(1, C).astype(jnp.float32)

    # ------------------ Kernel 1: normalize + fused QKV ------------------
    thw = _pick_tile(HW, hw_tile)
    n_hw = HW // thw
    qkv_spec = pl.BlockSpec((1, thw, C), lambda b, h: (b, h, 0))

    q, k, v = pl.pallas_call(
        norm_qkv_kernel,
        out_shape=(jax.ShapeDtypeStruct((B, HW, C), jnp.bfloat16),) * 3,
        grid=(B, n_hw),
        in_specs=[
            pl.BlockSpec((1, thw, C), lambda b, h: (b, h, 0)),   # x tile
            pl.BlockSpec((1, 1, C), lambda b, h: (b, 0, 0)),     # per-batch scale
            pl.BlockSpec((1, 1, C), lambda b, h: (b, 0, 0)),     # per-batch shift
            pl.BlockSpec((C, 3 * C), lambda b, h: (0, 0)),       # fused W^T
            pl.BlockSpec((1, 3 * C), lambda b, h: (0, 0)),       # fused bias
        ],
        out_specs=(qkv_spec, qkv_spec, qkv_spec),
        compiler_params=pltpu.CompilerParams(
            dimension_semantics=("parallel", "parallel"),
            vmem_limit_bytes=VMEM_LIMIT),
    )(x, scale, shift, w_fused, b_fused)

    # ------------- Kernel 2: attention + projection + residual -------------
    tq = _pick_tile(HW, q_tile)
    tkv = _pick_tile(HW, kv_tile)
    n_q = HW // tq

    out = pl.pallas_call(
        functools.partial(attn_proj_kernel, tkv),
        out_shape=jax.ShapeDtypeStruct((B, HW, C), jnp.float32),
        grid=(B, n_q),
        in_specs=[
            pl.BlockSpec((1, tq, C), lambda b, i: (b, i, 0)),    # q tile
            pl.BlockSpec((1, HW, C), lambda b, i: (b, 0, 0)),    # K resident per batch
            pl.BlockSpec((1, HW, C), lambda b, i: (b, 0, 0)),    # V resident per batch
            pl.BlockSpec((1, tq, C), lambda b, i: (b, i, 0)),    # x (residual)
            pl.BlockSpec((C, C), lambda b, i: (0, 0)),           # Wproj^T
            pl.BlockSpec((1, C), lambda b, i: (0, 0)),           # bproj
        ],
        out_specs=pl.BlockSpec((1, tq, C), lambda b, i: (b, i, 0)),
        compiler_params=pltpu.CompilerParams(
            dimension_semantics=("parallel", "parallel"),
            vmem_limit_bytes=VMEM_LIMIT),
    )(q, k, v, x, wpT, bp)

    return jnp.transpose(out, (0, 2, 1)).reshape(B, C, H, W)


def reference(x, gamma, beta, wqkv, bqkv, wproj, bproj):
    """Pure-JAX (f32) reference of the PyTorch forward pass."""
    B, C, H, W = x.shape
    HW = H * W
    g = C // NUM_GROUPS
    xr = x.reshape(B, NUM_GROUPS, g, HW)
    mean = xr.mean(axis=(2, 3), keepdims=True)
    var = xr.var(axis=(2, 3), keepdims=True)
    hn = ((xr - mean) / jnp.sqrt(var + EPS)).reshape(B, C, HW)
    hn = hn * gamma[None, :, None] + beta[None, :, None]
    qkv = jnp.einsum('oc,bcl->bol', wqkv, hn) + bqkv[None, :, None]
    q, k, v = qkv[:, :C], qkv[:, C:2 * C], qkv[:, 2 * C:]
    attn = jax.nn.softmax(
        jnp.einsum('bcl,bcm->blm', q, k) / math.sqrt(C), axis=-1)
    h = jnp.einsum('bcm,blm->bcl', v, attn)
    out = x.reshape(B, C, HW) + jnp.einsum('oc,bcl->bol', wproj, h) \
        + bproj[None, :, None]
    return out.reshape(B, C, H, W)


if __name__ == "__main__":
    B, C, H, W = 2, 32, 8, 8
    key = jax.random.PRNGKey(0)
    kx, k1, k2, k3, k4 = jax.random.split(key, 5)

    x = jax.random.normal(kx, (B, C, H, W), dtype=jnp.float32)

    # Deterministic parameter init (shapes from the module's __init__).
    gamma = jnp.ones((C,), jnp.float32)               # GroupNorm weight
    beta = jnp.zeros((C,), jnp.float32)               # GroupNorm bias
    bound = 1.0 / math.sqrt(C)                        # 1x1 conv fan_in = C
    wqkv = jax.random.uniform(k1, (3 * C, C), jnp.float32, -bound, bound)
    bqkv = jax.random.uniform(k2, (3 * C,), jnp.float32, -bound, bound)
    wproj = jax.random.uniform(k3, (C, C), jnp.float32, -bound, bound)
    bproj = jax.random.uniform(k4, (C,), jnp.float32, -bound, bound)

    out = attention_block(x, gamma, beta, wqkv, bqkv, wproj, bproj)
    out = jax.block_until_ready(out)

    ref = reference(x, gamma, beta, wqkv, bqkv, wproj, bproj)
    assert out.shape == (B, C, H, W)
    err = jnp.max(jnp.abs(out - ref))
    # bf16 MXU operands vs pure-f32 reference -> loosened tolerance.
    assert jnp.allclose(out, ref, atol=5e-2, rtol=5e-2), f"max err {err}"
    print("KERNEL_OK")
</pallas_src>

<mosaic_0001>
module attributes {stable_mosaic.version = 11 : i64} {
  func.func @norm_qkv_kernel(%arg0: i32, %arg1: i32, %arg2: memref<1x64x32xf32, #tpu.memory_space<vmem>>, %arg3: memref<1x1x32xf32, #tpu.memory_space<vmem>>, %arg4: memref<1x1x32xf32, #tpu.memory_space<vmem>>, %arg5: memref<32x96xbf16, #tpu.memory_space<vmem>>, %arg6: memref<1x96xf32, #tpu.memory_space<vmem>>, %arg7: memref<1x64x32xbf16, #tpu.memory_space<vmem>>, %arg8: memref<1x64x32xbf16, #tpu.memory_space<vmem>>, %arg9: memref<1x64x32xbf16, #tpu.memory_space<vmem>>) attributes {dimension_semantics = [#tpu.dimension_semantics<parallel>, #tpu.dimension_semantics<parallel>], iteration_bounds = array<i64: 2, 1>, scalar_prefetch = 0 : i64, scratch_operands = 0 : i64, tpu.core_type = #tpu.core_type<tc>, window_params = [{transform_indices = @transform_0, window_bounds = array<i64: 1, 64, 32>}, {transform_indices = @transform_1, window_bounds = array<i64: 1, 1, 32>}, {transform_indices = @transform_2, window_bounds = array<i64: 1, 1, 32>}, {pipeline_mode = #tpu.pipeline_mode<synchronous>, transform_indices = @transform_3, window_bounds = array<i64: 32, 96>}, {pipeline_mode = #tpu.pipeline_mode<synchronous>, transform_indices = @transform_4, window_bounds = array<i64: 1, 96>}, {transform_indices = @transform_5, window_bounds = array<i64: 1, 64, 32>}, {transform_indices = @transform_6, window_bounds = array<i64: 1, 64, 32>}, {transform_indices = @transform_7, window_bounds = array<i64: 1, 64, 32>}]} {
    %c0 = arith.constant 0 : index
    %c0_0 = arith.constant 0 : index
    %c0_1 = arith.constant 0 : index
    %0 = vector.load %arg2[%c0, %c0_0, %c0_1] : memref<1x64x32xf32, #tpu.memory_space<vmem>>, vector<1x64x32xf32>
    %1 = vector.shape_cast %0 : vector<1x64x32xf32> to vector<64x32xf32>
    %c0_2 = arith.constant 0 : index
    %c0_3 = arith.constant 0 : index
    %c0_4 = arith.constant 0 : index
    %2 = vector.load %arg3[%c0_2, %c0_3, %c0_4] : memref<1x1x32xf32, #tpu.memory_space<vmem>>, vector<1x1x32xf32>
    %3 = vector.shape_cast %2 : vector<1x1x32xf32> to vector<1x32xf32>
    %4 = vector.broadcast %3 : vector<1x32xf32> to vector<64x32xf32>
    %5 = arith.mulf %1, %4 : vector<64x32xf32>
    %c0_5 = arith.constant 0 : index
    %c0_6 = arith.constant 0 : index
    %c0_7 = arith.constant 0 : index
    %6 = vector.load %arg4[%c0_5, %c0_6, %c0_7] : memref<1x1x32xf32, #tpu.memory_space<vmem>>, vector<1x1x32xf32>
    %7 = vector.shape_cast %6 : vector<1x1x32xf32> to vector<1x32xf32>
    %8 = vector.broadcast %7 : vector<1x32xf32> to vector<64x32xf32>
    %9 = arith.addf %5, %8 : vector<64x32xf32>
    %10 = arith.truncf %9 : vector<64x32xf32> to vector<64x32xbf16>
    %c0_8 = arith.constant 0 : index
    %c0_9 = arith.constant 0 : index
    %11 = vector.load %arg5[%c0_8, %c0_9] : memref<32x96xbf16, #tpu.memory_space<vmem>>, vector<32x96xbf16>
    %cst = arith.constant dense<0.000000e+00> : vector<64x96xf32>
    %12 = tpu.matmul %10, %11, %cst {dimension_numbers = #tpu.dot_dimension_numbers<[1], [0], [0], [1], [0, 0, 1, 1], [], []>} : vector<64x32xbf16>, vector<32x96xbf16>, vector<64x96xf32> -> vector<64x96xf32>
    %c0_10 = arith.constant 0 : index
    %c0_11 = arith.constant 0 : index
    %13 = vector.load %arg6[%c0_10, %c0_11] : memref<1x96xf32, #tpu.memory_space<vmem>>, vector<1x96xf32>
    %14 = vector.broadcast %13 : vector<1x96xf32> to vector<64x96xf32>
    %15 = arith.addf %12, %14 : vector<64x96xf32>
    %16 = vector.extract_strided_slice %15 {offsets = [0, 0], sizes = [64, 32], strides = [1, 1]} : vector<64x96xf32> to vector<64x32xf32>
    %17 = arith.truncf %16 : vector<64x32xf32> to vector<64x32xbf16>
    %c0_12 = arith.constant 0 : index
    %c0_13 = arith.constant 0 : index
    %c0_14 = arith.constant 0 : index
    %18 = vector.load %arg7[%c0_12, %c0_13, %c0_14] : memref<1x64x32xbf16, #tpu.memory_space<vmem>>, vector<1x64x32xbf16>
    %19 = vector.shape_cast %18 : vector<1x64x32xbf16> to vector<64x32xbf16>
    %20 = vector.shape_cast %17 : vector<64x32xbf16> to vector<1x64x32xbf16>
    tpu.vector_store %arg7[%c0_12, %c0_13, %c0_14], %20 {strides = array<i32>} : memref<1x64x32xbf16, #tpu.memory_space<vmem>>, vector<1x64x32xbf16>,
    %21 = vector.extract_strided_slice %15 {offsets = [0, 32], sizes = [64, 32], strides = [1, 1]} : vector<64x96xf32> to vector<64x32xf32>
    %22 = arith.truncf %21 : vector<64x32xf32> to vector<64x32xbf16>
    %c0_15 = arith.constant 0 : index
    %c0_16 = arith.constant 0 : index
    %c0_17 = arith.constant 0 : index
    %23 = vector.load %arg8[%c0_15, %c0_16, %c0_17] : memref<1x64x32xbf16, #tpu.memory_space<vmem>>, vector<1x64x32xbf16>
    %24 = vector.shape_cast %23 : vector<1x64x32xbf16> to vector<64x32xbf16>
    %25 = vector.shape_cast %22 : vector<64x32xbf16> to vector<1x64x32xbf16>
    tpu.vector_store %arg8[%c0_15, %c0_16, %c0_17], %25 {strides = array<i32>} : memref<1x64x32xbf16, #tpu.memory_space<vmem>>, vector<1x64x32xbf16>,
    %26 = vector.extract_strided_slice %15 {offsets = [0, 64], sizes = [64, 32], strides = [1, 1]} : vector<64x96xf32> to vector<64x32xf32>
    %27 = arith.truncf %26 : vector<64x32xf32> to vector<64x32xbf16>
    %c0_18 = arith.constant 0 : index
    %c0_19 = arith.constant 0 : index
    %c0_20 = arith.constant 0 : index
    %28 = vector.load %arg9[%c0_18, %c0_19, %c0_20] : memref<1x64x32xbf16, #tpu.memory_space<vmem>>, vector<1x64x32xbf16>
    %29 = vector.shape_cast %28 : vector<1x64x32xbf16> to vector<64x32xbf16>
    %30 = vector.shape_cast %27 : vector<64x32xbf16> to vector<1x64x32xbf16>
    tpu.vector_store %arg9[%c0_18, %c0_19, %c0_20], %30 {strides = array<i32>} : memref<1x64x32xbf16, #tpu.memory_space<vmem>>, vector<1x64x32xbf16>,
    return
  }
  func.func @transform_0(%arg0: i32, %arg1: i32) -> (i32, i32, i32) {
    %c0_i32 = arith.constant 0 : i32
    %c0_i32_0 = arith.constant 0 : i32
    return %arg0, %arg1, %c0_i32 : i32, i32, i32
  }
  func.func @transform_1(%arg0: i32, %arg1: i32) -> (i32, i32, i32) {
    %c0_i32 = arith.constant 0 : i32
    %c0_i32_0 = arith.constant 0 : i32
    %c0_i32_1 = arith.constant 0 : i32
    return %arg0, %c0_i32, %c0_i32_0 : i32, i32, i32
  }
  func.func @transform_2(%arg0: i32, %arg1: i32) -> (i32, i32, i32) {
    %c0_i32 = arith.constant 0 : i32
    %c0_i32_0 = arith.constant 0 : i32
    %c0_i32_1 = arith.constant 0 : i32
    return %arg0, %c0_i32, %c0_i32_0 : i32, i32, i32
  }
  func.func @transform_3(%arg0: i32, %arg1: i32) -> (i32, i32) {
    %c0_i32 = arith.constant 0 : i32
    %c0_i32_0 = arith.constant 0 : i32
    %c0_i32_1 = arith.constant 0 : i32
    return %c0_i32, %c0_i32_0 : i32, i32
  }
  func.func @transform_4(%arg0: i32, %arg1: i32) -> (i32, i32) {
    %c0_i32 = arith.constant 0 : i32
    %c0_i32_0 = arith.constant 0 : i32
    %c0_i32_1 = arith.constant 0 : i32
    return %c0_i32, %c0_i32_0 : i32, i32
  }
  func.func @transform_5(%arg0: i32, %arg1: i32) -> (i32, i32, i32) {
    %c0_i32 = arith.constant 0 : i32
    %c0_i32_0 = arith.constant 0 : i32
    return %arg0, %arg1, %c0_i32 : i32, i32, i32
  }
  func.func @transform_6(%arg0: i32, %arg1: i32) -> (i32, i32, i32) {
    %c0_i32 = arith.constant 0 : i32
    %c0_i32_0 = arith.constant 0 : i32
    return %arg0, %arg1, %c0_i32 : i32, i32, i32
  }
  func.func @transform_7(%arg0: i32, %arg1: i32) -> (i32, i32, i32) {
    %c0_i32 = arith.constant 0 : i32
    %c0_i32_0 = arith.constant 0 : i32
    return %arg0, %arg1, %c0_i32 : i32, i32, i32
  }
}

</mosaic_0001>

<bundles_post_ra>
// kernel: tpu_custom_call.1
= control target key start
LH: loop header
LB: loop body
LE: loop exit
PB: predicated region body
PF: predicated region fallthrough
CT: control target
= control target key end

     0   :  { %s1007_s24 = smov 0   ;;  %s1009_s25 = smov 0   ;;  %s1110_s0 = inlined_call_operand.vmem [shape: f32[2,64,32], index: 0, kind: input, shape index: {}]   ;;  %s1111_s1 = inlined_call_operand.vmem [shape: f32[2,1,32], index: 1, kind: input, shape index: {}]   ;;  %s1112_s2 = inlined_call_operand.vmem [shape: f32[2,1,32], index: 2, kind: input, shape index: {}]   ;;  %s1113_s3 = inlined_call_operand.vmem [shape: bf16[32,96], index: 3, kind: input, shape index: {}]   ;;  %s1114_s4 = inlined_call_operand.vmem [shape: f32[1,96], index: 4, kind: input, shape index: {}]   ;;  %s1115_s5 = inlined_call_operand.vmem [shape: bf16[2,64,32], index: 5, kind: output, shape index: {0}]   ;;  %s1116_s6 = inlined_call_operand.vmem [shape: bf16[2,64,32], index: 6, kind: output, shape index: {1}]   ;;  %s1117_s7 = inlined_call_operand.vmem [shape: bf16[2,64,32], index: 7, kind: output, shape index: {2}]  }
   0x1   :  { %s1011_s26 = smov 0  }
   0x2 LB: > { %s30_s27 = sadd.s32 1, %s959_s25  ;;  %p851_p0 = scmp.ge.s32.totalorder %s963_s26, 1  ;;  %s963_s26 = sphi %s1011_s26, %s18_s26   ;;  %s959_s25 = sphi %s1009_s25, %s1119_s25   ;;  %s955_s24 = sphi %s1007_s24, %s1118_s24  }
   0x3   : > { %p32_p1 = scmp.ge.s32.totalorder %s30_s27, 2  ;;  %p283_p2 = scmp.lt.s32.totalorder %s963_s26, 3 }
   0x5   : > { %s1121_s27 = smov (%p32_p1, %s30_s27), 0  ;;  %p284_p3 = pnand %p851_p0, %p283_p2 }
   0x6   : > { %v939_v0 = vld [vmem:[%s1113_s3] sm:$0xff] (!%p284_p3)   ;;  %p348_p4 = scmp.lt.s32.totalorder (!%p284_p3), %s955_s24, 1  ;;  %v940_v1 = vld [vmem:[%s1113_s3 + $0x8] sm:$0xff] (!%p284_p3)   ;;  %vm459_vm0 = vcmask (!%p284_p3), 261120   ;;  %vm569_vm1 = vcmask (!%p284_p3), 257024   ;;  %s966_s29 = smov (!%p284_p3), 64  }
   0x7   : > { %287 = sbr.rel (%p284_p3) target bundleno = 387 (0x183), region = 40  ;;  %897 = vmatprep.subr.bf16.mxu0 (!%p284_p3), %v939_v0  ;;  %909 = vmatprep.subr.bf16.mxu1 (!%p284_p3), %v939_v0  ;;  %v862_v32 = vld [vmem:[%s1114_s4] ss:$0 sm:$0xff] (!%p284_p3) }
   0x8   : > { %898 = vmatpush3.bf16.msra.mxu0 (!%p284_p3), %v939_v0  ;;  %911 = vmatpush3.bf16.msra.mxu1 (!%p284_p3), %v939_v0 }
   0x9   : > { %899 = vmatprep.subr.bf16.mxu0 (!%p284_p3), %v940_v1  ;;  %910 = vmatprep.subr.bf16.mxu1 (!%p284_p3), %v940_v1 }
   0xc   : > { %900 = vmatpush3.bf16.msra.mxu0 (!%p284_p3), %v940_v1  ;;  %912 = vmatpush3.bf16.msra.mxu1 (!%p284_p3), %v940_v1 }
   0xe   : > { %s1123_s24 = smov (!%p348_p4, %s955_s24), 1 }
   0xf   : > { %s879_s9 = sshll.u32 %s1123_s24, 6  ;;  %s359_s12 = scalar_lea.vmem %s1111_s1, %s1123_s24 }
  0x10   : > { %s355_s15 = scalar_lea.vmem %s1110_s0, %s879_s9  ;;  %s362_s18 = scalar_lea.vmem %s1112_s2, %s1123_s24  ;;  %v860_v2 = vld [vmem:[%s359_s12] ss:$0 sm:$0xff] }
  0x11   : > { %v394_v3 = vld [vmem:[%s355_s15] sm:$0xff]  ;;  %v395_v4 = vld [vmem:[%s355_s15 + $0x8] sm:$0xff]  ;;  %v396_v10 = vld [vmem:[%s355_s15 + $0x10] sm:$0xff]  ;;  %s1053_s21 = sshll.u32 %s1123_s24, 5  ;;  %s965_s24 = smov 96  }
  0x12   : > { %v861_v5 = vld [vmem:[%s362_s18] ss:$0 sm:$0xff]  ;;  %v409_v6 = vmul.f32 %v860_v2, %v394_v3  ;;  %v410_v7 = vmul.f32 %v860_v2, %v395_v4  ;;  %v399_v9 = vld [vmem:[%s355_s15 + $0x28] sm:$0xff]  ;;  %v397_v13 = vld [vmem:[%s355_s15 + $0x18] sm:$0xff]  ;;  %v411_v14 = vmul.f32 %v860_v2, %v396_v10  ;;  %s1059_s28 = scalar_lea.vmem %s1115_s5, %s1053_s21  ;;  %s381_s9 = scalar_lea.vmem %s1116_s6, %s1053_s21 }
  0x13   : > { %v398_v8 = vld [vmem:[%s355_s15 + $0x20] sm:$0xff]  ;;  %v414_v12 = vmul.f32 %v860_v2, %v399_v9  ;;  %v400_v15 = vld [vmem:[%s355_s15 + $0x30] sm:$0xff]  ;;  %v401_v16 = vld [vmem:[%s355_s15 + $0x38] sm:$0xff]  ;;  %v412_v19 = vmul.f32 %v860_v2, %v397_v13  ;;  %s391_s12 = scalar_lea.vmem %s1117_s7, %s1053_s21 }
  0x14   : > { %v413_v11 = vmul.f32 %v860_v2, %v398_v8  ;;  %v424_v17 = vadd.f32 %v861_v5, %v409_v6  ;;  %v425_v18 = vadd.f32 %v861_v5, %v410_v7  ;;  %v415_v20 = vmul.f32 %v860_v2, %v400_v15 }
  0x15   : > { %v429_v22 = vadd.f32 %v861_v5, %v414_v12  ;;  %v426_v23 = vadd.f32 %v861_v5, %v411_v14  ;;  %v416_v24 = vmul.f32 %v860_v2, %v401_v16  ;;  %v427_v26 = vadd.f32 %v861_v5, %v412_v19 }
  0x16   : > { %v428_v21 = vadd.f32 %v861_v5, %v413_v11  ;;  %v432_v25 = vpack.c.bf16 %v425_v18, %v424_v17  ;;  %v430_v27 = vadd.f32 %v861_v5, %v415_v20 }
  0x17   : > { %v431_v29 = vadd.f32 %v861_v5, %v416_v24  ;;  %v433_v30 = vpack.c.bf16 %v427_v26, %v426_v23 }
  0x18   : > { %v434_v28 = vpack.c.bf16 %v429_v22, %v428_v21  ;;  %901 = vmatprep.mubr.msk.bf16.mxu0 %vm459_vm0, %v432_v25 }
  0x19   : > { %v435_v31 = vpack.c.bf16 %v431_v29, %v430_v27  ;;  %902 = vmatmul.mubr.msk.bf16.vlgmr.msra.gmra.mrb[0].mxu0 %vm459_vm0, %v433_v30 }
  0x1a   : > { %905 = vmatprep.mubr.msk.bf16.mxu1 %vm459_vm0, %v434_v28 }
  0x1b   : > { %906 = vmatmul.mubr.msk.bf16.vlgmr.msra.gmra.mrb[0].mxu1 %vm459_vm0, %v435_v31 }
  0xec   : > { %v903_v33 = vpop.f32.mrb[0].mxu0 }
  0xed   : > { %v515_v34 = vadd.f32 %v903_v33, %v862_v32  ;;  %v506_v36 = vpop.f32.mrb[1].mxu0 }
  0xee   : > { %v907_v35 = vpop.f32.mrb[0].mxu1  ;;  %v507_v38 = vadd.f32 %v862_v32, %v506_v36  ;;  %v904_v40 = vpop.f32.mrb[2].mxu0 }
  0xef   : > { %v531_v37 = vadd.f32 %v907_v35, %v862_v32  ;;  %v522_v39 = vpop.f32.mrb[1].mxu1  ;;  %v885_v41 = vpack.c.bf16 %v515_v34, %v515_v34  ;;  %v518_v43 = vadd.f32 %v904_v40, %v862_v32  ;;  %v509_v45 = vpop.f32.mrb[3].mxu0 }
  0xf0   : > { %v523_v42 = vadd.f32 %v862_v32, %v522_v39  ;;  %v908_v44 = vpop.f32.mrb[2].mxu1  ;;  %v883_v47 = vpack.c.bf16 %v507_v38, %v507_v38  ;;  %v510_v49 = vadd.f32 %v862_v32, %v509_v45 }
  0xf1   : > { %v889_v46 = vpack.c.bf16 %v531_v37, %v531_v37  ;;  %v534_v48 = vadd.f32 %v908_v44, %v862_v32  ;;  %v525_v50 = vpop.f32.mrb[3].mxu1  ;;  %572 = vst.msk [vmem:[%s1059_s28 + $0x8] sm:$0xf] %vm569_vm1, %v885_v41  ;;  %v886_v52 = vpack.c.bf16 %v518_v43, %v518_v43  ;;  %582 = vrot.lane.b32.xlu1 %v885_v41, %s965_s24 }
  0xf2   : > { %v887_v51 = vpack.c.bf16 %v523_v42, %v523_v42  ;;  %v526_v53 = vadd.f32 %v862_v32, %v525_v50  ;;  %570 = vst.msk [vmem:[%s1059_s28] sm:$0xf] %vm569_vm1, %v883_v47  ;;  %v884_v55 = vpack.c.bf16 %v510_v49, %v510_v49 }
  0xf3   : > { %576 = vst.msk [vmem:[%s1059_s28 + $0x18] sm:$0xf] %vm569_vm1, %v889_v46  ;;  %v890_v54 = vpack.c.bf16 %v534_v48, %v534_v48  ;;  %590 = vrot.lane.b32.xlu0 %v889_v46, %s965_s24  ;;  %573 = vst.msk [vmem:[%s1059_s28 + $0xc] sm:$0xf] %vm569_vm1, %v886_v52 }
  0xf4   : > { %574 = vst.msk [vmem:[%s1059_s28 + $0x10] sm:$0xf] %vm569_vm1, %v887_v51  ;;  %v888_v56 = vpack.c.bf16 %v526_v53, %v526_v53  ;;  %571 = vst.msk [vmem:[%s1059_s28 + $0x4] sm:$0xf] %vm569_vm1, %v884_v55 }
  0xf5   : > { %577 = vst.msk [vmem:[%s1059_s28 + $0x1c] sm:$0xf] %vm569_vm1, %v890_v54  ;;  %584 = vrot.lane.b32.xlu1 %v886_v52, %s965_s24 }
  0xf6   : > { %575 = vst.msk [vmem:[%s1059_s28 + $0x14] sm:$0xf] %vm569_vm1, %v888_v56 }
  0xf7   : > { %614 = vrot.lane.b32.xlu0 %v885_v41, %s966_s29 }
  0xf9   : > { %592 = vrot.lane.b32.xlu1 %v890_v54, %s965_s24 }
  0xfb   : > { %578 = vrot.lane.b32.xlu0 %v883_v47, %s965_s24 }
  0xfd   : > { %616 = vrot.lane.b32.xlu1 %v886_v52, %s966_s29 }
  0xff   : > { %586 = vrot.lane.b32.xlu0 %v887_v51, %s965_s24 }
 0x101   : > { %588 = vrot.lane.b32.xlu1 %v888_v56, %s965_s24 }
 0x103   : > { %610 = vrot.lane.b32.xlu0 %v883_v47, %s966_s29 }
 0x105   : > { %612 = vrot.lane.b32.xlu1 %v884_v55, %s966_s29 }
 0x107   : > { %618 = vrot.lane.b32.xlu0 %v887_v51, %s966_s29 }
 0x109   : > { %620 = vrot.lane.b32.xlu1 %v888_v56, %s966_s29 }
 0x10b   : > { %580 = vrot.lane.b32.xlu0 %v884_v55, %s965_s24 }
 0x10d   : > { %624 = vrot.lane.b32.xlu1 %v890_v54, %s966_s29 }
 0x10f   : > { %622 = vrot.lane.b32.xlu0 %v889_v46, %s966_s29 }
 0x163   : > { %v583_v57 = vpop.permute.xlu1 %582 }
 0x164   : > { %604 = vst.msk [vmem:[%s381_s9 + $0x8] sm:$0xf] %vm569_vm1, %v583_v57 }
 0x165   : > { %v591_v58 = vpop.permute.xlu0 %590 }
 0x166   : > { %608 = vst.msk [vmem:[%s381_s9 + $0x18] sm:$0xf] %vm569_vm1, %v591_v58 }
 0x167   : > { %v585_v59 = vpop.permute.xlu1 %584 }
 0x168   : > { %605 = vst.msk [vmem:[%s381_s9 + $0xc] sm:$0xf] %vm569_vm1, %v585_v59 }
 0x169   : > { %v615_v60 = vpop.permute.xlu0 %614 }
 0x16a   : > { %636 = vst.msk [vmem:[%s391_s12 + $0x8] sm:$0xf] %vm569_vm1, %v615_v60 }
 0x16b   : > { %v593_v61 = vpop.permute.xlu1 %592 }
 0x16c   : > { %609 = vst.msk [vmem:[%s381_s9 + $0x1c] sm:$0xf] %vm569_vm1, %v593_v61 }
 0x16d   : > { %v579_v62 = vpop.permute.xlu0 %578 }
 0x16e   : > { %602 = vst.msk [vmem:[%s381_s9] sm:$0xf] %vm569_vm1, %v579_v62 }
 0x16f   : > { %v617_v63 = vpop.permute.xlu1 %616 }
 0x170   : > { %637 = vst.msk [vmem:[%s391_s12 + $0xc] sm:$0xf] %vm569_vm1, %v617_v63 }
 0x171   : > { %v587_v0 = vpop.permute.xlu0 %586 }
 0x172   : > { %606 = vst.msk [vmem:[%s381_s9 + $0x10] sm:$0xf] %vm569_vm1, %v587_v0 }
 0x173   : > { %v589_v1 = vpop.permute.xlu1 %588 }
 0x174   : > { %607 = vst.msk [vmem:[%s381_s9 + $0x14] sm:$0xf] %vm569_vm1, %v589_v1 }
 0x175   : > { %v611_v2 = vpop.permute.xlu0 %610 }
 0x176   : > { %634 = vst.msk [vmem:[%s391_s12] sm:$0xf] %vm569_vm1, %v611_v2 }
 0x177   : > { %v613_v3 = vpop.permute.xlu1 %612 }
 0x178   : > { %635 = vst.msk [vmem:[%s391_s12 + $0x4] sm:$0xf] %vm569_vm1, %v613_v3 }
 0x179   : > { %v619_v4 = vpop.permute.xlu0 %618 }
 0x17a   : > { %638 = vst.msk [vmem:[%s391_s12 + $0x10] sm:$0xf] %vm569_vm1, %v619_v4 }
 0x17b   : > { %v621_v5 = vpop.permute.xlu1 %620 }
 0x17c   : > { %639 = vst.msk [vmem:[%s391_s12 + $0x14] sm:$0xf] %vm569_vm1, %v621_v5 }
 0x17d   : > { %v581_v6 = vpop.permute.xlu0 %580 }
 0x17e   : > { %603 = vst.msk [vmem:[%s381_s9 + $0x4] sm:$0xf] %vm569_vm1, %v581_v6 }
 0x17f   : > { %v625_v7 = vpop.permute.xlu1 %624 }
 0x180   : > { %641 = vst.msk [vmem:[%s391_s12 + $0x1c] sm:$0xf] %vm569_vm1, %v625_v7 }
 0x181   : > { %v623_v8 = vpop.permute.xlu0 %622 }
 0x182   : > { %640 = vst.msk [vmem:[%s391_s12 + $0x18] sm:$0xf] %vm569_vm1, %v623_v8 }
 0x183 PF: > { %s18_s26 = sadd.s32 1, %s963_s26   ;;  %s1118_s24 = smov %s959_s25 }
 0x184   : > { %p15_p5 = scmp.ge.s32.totalorder %s18_s26, 4   ;;  %s1119_s25 = smov %s1121_s27 }
 0x186   :  { %17 = sbr.rel (!%p15_p5) target bundleno = 2 (0x2), region = 100 }

</bundles_post_ra>
